<compile_context>
chip_gen: v7x
topology: tpu7x:2x2x1
jax: 0.10.0
libtpu: 0.0.40
codegen_flags: <defaults>
</compile_context>

<pallas_src>
import math
import functools

import jax
import jax.numpy as jnp
from jax.experimental import pallas as pl
from jax.experimental.pallas import tpu as pltpu

LANE = 128


def _layernorm(x, w, b, eps=1e-5):
    # LayerNorm over the last axis (matches torch.nn.LayerNorm defaults).
    mean = jnp.mean(x, axis=-1, keepdims=True)
    var = jnp.mean((x - mean) ** 2, axis=-1, keepdims=True)
    return (x - mean) * jax.lax.rsqrt(var + eps) * w + b


# ----------------------------------------------------------------------------
# Fused encoder kernel: one (batch-block, layer) grid step.
# ----------------------------------------------------------------------------
def encoder_kernel(n_head,
                   x_ref, ln_ref, wqkv_ref, bqkv_ref, wo_ref, bc_ref,
                   w1_ref, b1_ref, w2_ref, fln_ref,
                   xmean_ref, attn_ref,
                   x_scr):
    l = pl.program_id(1)
    n_layer = pl.num_programs(1)

    # Load the residual stream into VMEM scratch at layer 0 of each batch
    # block; it stays resident across the layer ("arbitrary") axis.
    @pl.when(l == 0)
    def _():
        x_scr[...] = x_ref[...]

    x = x_scr[0]                                   # (T, C) float32
    T, C = x.shape
    Dh = C // n_head
    scale = 1.0 / math.sqrt(Dh)

    ln = ln_ref[0]                                 # (4, C): ln1_w, ln1_b, ln2_w, ln2_b
    bc = bc_ref[0]                                 # (2, C): out-proj bias, ffn-out bias

    # ---- attention branch (all heads batched) -------------------------------
    h = _layernorm(x, ln[0], ln[1])
    # fused QKV projection: one (C, 3C) MXU matmul instead of three (C, C)
    qkv = jnp.dot(h, wqkv_ref[0],
                  preferred_element_type=jnp.float32) + bqkv_ref[0]   # (T, 3C)

    # head split via a sublane-aligned reshape of the transposed activations
    qkv_t = qkv.T.reshape(3, n_head, Dh, T)        # (3, H, Dh, T)
    q_t, k_t, v_t = qkv_t[0], qkv_t[1], qkv_t[2]   # each (H, Dh, T)

    scores = jnp.einsum('hdt,hds->hts', q_t, k_t,
                        preferred_element_type=jnp.float32) * scale   # (H, T, T)
    # TODO(synk): ALiBi positional bias (use_alibi=True) is not implemented;
    #             this covers the default use_alibi=False path.
    m = jnp.max(scores, axis=-1, keepdims=True)
    e = jnp.exp(scores - m)
    attn = e * pl.reciprocal(jnp.sum(e, axis=-1, keepdims=True), approx=True)
    # single store of the full per-layer attention map (attn dropout = identity)
    attn_ref[...] = attn.reshape(1, 1, n_head * T, T)

    ctx = jnp.einsum('hts,hds->htd', attn, v_t,
                     preferred_element_type=jnp.float32)              # (H, T, Dh)
    ctx = jnp.transpose(ctx, (0, 2, 1)).reshape(C, T)                 # (C, T)
    proj = jnp.einsum('ct,cd->td', ctx, wo_ref[0],
                      preferred_element_type=jnp.float32) + bc[0]
    x = x + proj                                   # residual (dropout = identity)

    # ---- feed-forward branch -------------------------------------------------
    h2 = _layernorm(x, ln[2], ln[3])
    hid = jnp.dot(h2, w1_ref[0],
                  preferred_element_type=jnp.float32) + b1_ref[0]     # (T, d_ffp)
    hid = jnp.maximum(hid, 0.0)                    # ReLU (d_ff zero-padded, exact)
    ff = jnp.dot(hid, w2_ref[0],
                 preferred_element_type=jnp.float32) + bc[1]
    x = x + ff                                     # residual (dropout = identity)

    x_scr[...] = x[None]

    # ---- final LayerNorm + mean pool, fused into the last layer step --------
    @pl.when(l == n_layer - 1)
    def _():
        fln = fln_ref[...]
        xf = _layernorm(x, fln[0], fln[1])
        xmean_ref[...] = jnp.mean(xf, axis=0, keepdims=True)[None]    # (1, 1, C)


# ----------------------------------------------------------------------------
# Parameters (torch-like layout) and packing into stacked kernel inputs.
# ----------------------------------------------------------------------------
def init_params(key, vocab_size, n_embd, n_layer, block_size, d_ff=100):
    def normal(k, shape):
        return jax.random.normal(k, shape, dtype=jnp.float32) * 0.02

    keys = iter(jax.random.split(key, 2 + n_layer * 6))
    params = {
        "token_emb": normal(next(keys), (vocab_size, n_embd)),
        "pos_emb": normal(next(keys), (block_size, n_embd)),
        "final_ln_w": jnp.ones((n_embd,), jnp.float32),
        "final_ln_b": jnp.zeros((n_embd,), jnp.float32),
        "layers": [],
    }
    for _ in range(n_layer):
        # NOTE: linear weights are stored (in, out) = transpose of torch's
        # nn.Linear.weight; keep that convention when loading real weights.
        layer = {
            "ln1_w": jnp.ones((n_embd,), jnp.float32),
            "ln1_b": jnp.zeros((n_embd,), jnp.float32),
            "wq": normal(next(keys), (n_embd, n_embd)),
            "bq": jnp.zeros((n_embd,), jnp.float32),
            "wk": normal(next(keys), (n_embd, n_embd)),
            "bk": jnp.zeros((n_embd,), jnp.float32),
            "wv": normal(next(keys), (n_embd, n_embd)),
            "bv": jnp.zeros((n_embd,), jnp.float32),
            "wo": normal(next(keys), (n_embd, n_embd)),
            "bo": jnp.zeros((n_embd,), jnp.float32),
            "ln2_w": jnp.ones((n_embd,), jnp.float32),
            "ln2_b": jnp.zeros((n_embd,), jnp.float32),
            "w1": normal(next(keys), (n_embd, d_ff)),
            "b1": jnp.zeros((d_ff,), jnp.float32),
            "w2": normal(next(keys), (d_ff, n_embd)),
            "b2": jnp.zeros((n_embd,), jnp.float32),
        }
        params["layers"].append(layer)
    return params


def pack_params(params):
    """Stack per-layer params into a few arrays (layer axis leading) and
    zero-pad d_ff to a 128-lane multiple (mathematically exact)."""
    layers = params["layers"]
    d_ff = layers[0]["w1"].shape[1]
    d_ffp = ((d_ff + LANE - 1) // LANE) * LANE
    pad = d_ffp - d_ff

    ln_pack = jnp.stack([jnp.stack([ly["ln1_w"], ly["ln1_b"],
                                    ly["ln2_w"], ly["ln2_b"]]) for ly in layers])
    w_qkv = jnp.stack([jnp.concatenate([ly["wq"], ly["wk"], ly["wv"]], axis=1)
                       for ly in layers])
    b_qkv = jnp.stack([jnp.concatenate([ly["bq"], ly["bk"], ly["bv"]])[None, :]
                       for ly in layers])
    w_o = jnp.stack([ly["wo"] for ly in layers])
    bias_c = jnp.stack([jnp.stack([ly["bo"], ly["b2"]]) for ly in layers])
    w1 = jnp.stack([jnp.pad(ly["w1"], ((0, 0), (0, pad))) for ly in layers])
    b1 = jnp.stack([jnp.pad(ly["b1"], (0, pad))[None, :] for ly in layers])
    w2 = jnp.stack([jnp.pad(ly["w2"], ((0, pad), (0, 0))) for ly in layers])
    fln = jnp.stack([params["final_ln_w"], params["final_ln_b"]])
    return ln_pack, w_qkv, b_qkv, w_o, bias_c, w1, b1, w2, fln


# ----------------------------------------------------------------------------
# Full encoder forward (embedding lookup is plain-JAX glue; everything else —
# layernorm / attention / FFN / pooling — runs in a single fused Pallas call).
# ----------------------------------------------------------------------------
def transformer_encoder_forward(token_ids, params, n_head):
    B, T = token_ids.shape
    C = params["token_emb"].shape[1]

    tok_emb = jnp.take(params["token_emb"], token_ids, axis=0)        # (B, T, C)
    pos_emb = params["pos_emb"][:T][None, :, :]
    x = tok_emb + pos_emb                                             # dropout = identity

    ln_pack, w_qkv, b_qkv, w_o, bias_c, w1, b1, w2, fln = pack_params(params)
    n_layer = ln_pack.shape[0]
    d_ffp = w1.shape[-1]
    HT = n_head * T

    kernel = functools.partial(encoder_kernel, n_head)

    x_mean, attn_all = pl.pallas_call(
        kernel,
        out_shape=(jax.ShapeDtypeStruct((B, 1, C), jnp.float32),
                   jax.ShapeDtypeStruct((n_layer, B, HT, T), jnp.float32)),
        grid_spec=pltpu.PrefetchScalarGridSpec(
            num_scalar_prefetch=0,
            grid=(B, n_layer),                                        # (batch, layer)
            in_specs=[
                pl.BlockSpec((1, T, C), lambda b, l: (b, 0, 0)),       # x
                pl.BlockSpec((1, 4, C), lambda b, l: (l, 0, 0)),       # LN pack
                pl.BlockSpec((1, C, 3 * C), lambda b, l: (l, 0, 0)),   # W_qkv
                pl.BlockSpec((1, 1, 3 * C), lambda b, l: (l, 0, 0)),   # b_qkv
                pl.BlockSpec((1, C, C), lambda b, l: (l, 0, 0)),       # W_o
                pl.BlockSpec((1, 2, C), lambda b, l: (l, 0, 0)),       # b_o / b2
                pl.BlockSpec((1, C, d_ffp), lambda b, l: (l, 0, 0)),   # W1 (padded)
                pl.BlockSpec((1, 1, d_ffp), lambda b, l: (l, 0, 0)),   # b1 (padded)
                pl.BlockSpec((1, d_ffp, C), lambda b, l: (l, 0, 0)),   # W2 (padded)
                pl.BlockSpec((2, C), lambda b, l: (0, 0)),             # final LN
            ],
            out_specs=(
                pl.BlockSpec((1, 1, C), lambda b, l: (b, 0, 0)),       # pooled output
                pl.BlockSpec((1, 1, HT, T), lambda b, l: (l, b, 0, 0)),  # attn maps
            ),
            scratch_shapes=[pltpu.VMEM((1, T, C), jnp.float32)],       # residual stream
        ),
        compiler_params=pltpu.CompilerParams(
            dimension_semantics=("parallel", "arbitrary")),
    )(x, ln_pack, w_qkv, b_qkv, w_o, bias_c, w1, b1, w2, fln)

    x_mean = x_mean[:, 0, :]                                          # (B, C)
    attn_all = attn_all.reshape(n_layer, B, n_head, T, T)
    attention_maps = [attn_all[i] for i in range(n_layer)]
    return x_mean, attention_maps


if __name__ == "__main__":
    vocab_size = 50
    n_embd = 32
    n_head = 4
    n_layer = 2
    block_size = 16
    B, T = 2, 8

    key = jax.random.PRNGKey(0)
    k_params, k_tokens = jax.random.split(key)

    params = init_params(k_params, vocab_size, n_embd, n_layer, block_size)
    token_ids = jax.random.randint(k_tokens, (B, T), 0, vocab_size, dtype=jnp.int32)

    fwd = jax.jit(transformer_encoder_forward, static_argnames=("n_head",))
    x_mean, attention_maps = fwd(token_ids, params, n_head=n_head)
    jax.block_until_ready(x_mean)
    for a in attention_maps:
        jax.block_until_ready(a)

    assert x_mean.shape == (B, n_embd) and x_mean.dtype == jnp.float32
    assert all(a.shape == (B, n_head, T, T) for a in attention_maps)
    # attention rows should sum to ~1 (approx reciprocal tolerance)
    for a in attention_maps:
        assert jnp.allclose(jnp.sum(a, axis=-1), 1.0, atol=1e-2)
    print("KERNEL_OK")
</pallas_src>

<mosaic_0001>
module attributes {stable_mosaic.version = 11 : i64} {
  func.func @encoder_kernel(%arg0: i32, %arg1: i32, %arg2: memref<1x8x32xf32, #tpu.memory_space<vmem>>, %arg3: memref<1x4x32xf32, #tpu.memory_space<vmem>>, %arg4: memref<1x32x96xf32, #tpu.memory_space<vmem>>, %arg5: memref<1x1x96xf32, #tpu.memory_space<vmem>>, %arg6: memref<1x32x32xf32, #tpu.memory_space<vmem>>, %arg7: memref<1x2x32xf32, #tpu.memory_space<vmem>>, %arg8: memref<1x32x128xf32, #tpu.memory_space<vmem>>, %arg9: memref<1x1x128xf32, #tpu.memory_space<vmem>>, %arg10: memref<1x128x32xf32, #tpu.memory_space<vmem>>, %arg11: memref<2x32xf32, #tpu.memory_space<vmem>>, %arg12: memref<1x1x32xf32, #tpu.memory_space<vmem>>, %arg13: memref<1x1x32x8xf32, #tpu.memory_space<vmem>>, %arg14: memref<1x8x32xf32, #tpu.memory_space<vmem>>) attributes {dimension_semantics = [#tpu.dimension_semantics<parallel>, #tpu.dimension_semantics<arbitrary>], iteration_bounds = array<i64: 2, 2>, scalar_prefetch = 0 : i64, scratch_operands = 1 : i64, tpu.core_type = #tpu.core_type<tc>, window_params = [{transform_indices = @transform_0, window_bounds = array<i64: 1, 8, 32>}, {transform_indices = @transform_1, window_bounds = array<i64: 1, 4, 32>}, {transform_indices = @transform_2, window_bounds = array<i64: 1, 32, 96>}, {transform_indices = @transform_3, window_bounds = array<i64: 1, 1, 96>}, {transform_indices = @transform_4, window_bounds = array<i64: 1, 32, 32>}, {transform_indices = @transform_5, window_bounds = array<i64: 1, 2, 32>}, {transform_indices = @transform_6, window_bounds = array<i64: 1, 32, 128>}, {transform_indices = @transform_7, window_bounds = array<i64: 1, 1, 128>}, {transform_indices = @transform_8, window_bounds = array<i64: 1, 128, 32>}, {pipeline_mode = #tpu.pipeline_mode<synchronous>, transform_indices = @transform_9, window_bounds = array<i64: 2, 32>}, {transform_indices = @transform_10, window_bounds = array<i64: 1, 1, 32>}, {transform_indices = @transform_11, window_bounds = array<i64: 1, 1, 32, 8>}]} {
    %c0_i32 = arith.constant 0 : i32
    %0 = arith.cmpi eq, %arg1, %c0_i32 : i32
    %1 = arith.extui %0 : i1 to i32
    %c0_i32_0 = arith.constant 0 : i32
    %2 = arith.cmpi ne, %1, %c0_i32_0 : i32
    scf.if %2 {
      %c0_54 = arith.constant 0 : index
      %c0_55 = arith.constant 0 : index
      %c0_56 = arith.constant 0 : index
      %130 = vector.load %arg2[%c0_54, %c0_55, %c0_56] : memref<1x8x32xf32, #tpu.memory_space<vmem>>, vector<1x8x32xf32>
      %c0_57 = arith.constant 0 : index
      %c0_58 = arith.constant 0 : index
      %c0_59 = arith.constant 0 : index
      %131 = vector.load %arg14[%c0_57, %c0_58, %c0_59] : memref<1x8x32xf32, #tpu.memory_space<vmem>>, vector<1x8x32xf32>
      tpu.vector_store %arg14[%c0_57, %c0_58, %c0_59], %130 {strides = array<i32>} : memref<1x8x32xf32, #tpu.memory_space<vmem>>, vector<1x8x32xf32>,
    } else {
    }
    %c0 = arith.constant 0 : index
    %c0_1 = arith.constant 0 : index
    %c0_2 = arith.constant 0 : index
    %3 = vector.load %arg14[%c0, %c0_1, %c0_2] : memref<1x8x32xf32, #tpu.memory_space<vmem>>, vector<1x8x32xf32>
    %4 = vector.shape_cast %3 : vector<1x8x32xf32> to vector<8x32xf32>
    %c0_3 = arith.constant 0 : index
    %c0_4 = arith.constant 0 : index
    %c0_5 = arith.constant 0 : index
    %5 = vector.load %arg3[%c0_3, %c0_4, %c0_5] : memref<1x4x32xf32, #tpu.memory_space<vmem>>, vector<1x4x32xf32>
    %6 = vector.shape_cast %5 : vector<1x4x32xf32> to vector<4x32xf32>
    %c0_6 = arith.constant 0 : index
    %c0_7 = arith.constant 0 : index
    %c0_8 = arith.constant 0 : index
    %7 = vector.load %arg7[%c0_6, %c0_7, %c0_8] : memref<1x2x32xf32, #tpu.memory_space<vmem>>, vector<1x2x32xf32>
    %8 = vector.shape_cast %7 : vector<1x2x32xf32> to vector<2x32xf32>
    %9 = vector.extract_strided_slice %6 {offsets = [0, 0], sizes = [1, 32], strides = [1, 1]} : vector<4x32xf32> to vector<1x32xf32>
    %10 = vector.shape_cast %9 : vector<1x32xf32> to vector<32xf32>
    %11 = vector.extract_strided_slice %6 {offsets = [1, 0], sizes = [1, 32], strides = [1, 1]} : vector<4x32xf32> to vector<1x32xf32>
    %12 = vector.shape_cast %11 : vector<1x32xf32> to vector<32xf32>
    %cst = arith.constant dense<0.000000e+00> : vector<8xf32>
    %13 = vector.multi_reduction <add>, %4, %cst [1] : vector<8x32xf32> to vector<8xf32>
    %14 = vector.shape_cast %13 : vector<8xf32> to vector<8x1xf32>
    %cst_9 = arith.constant 3.200000e+01 : f32
    %15 = vector.broadcast %cst_9 : f32 to vector<8x1xf32>
    %16 = arith.divf %14, %15 : vector<8x1xf32>
    %17 = vector.broadcast %16 : vector<8x1xf32> to vector<8x32xf32>
    %18 = arith.subf %4, %17 : vector<8x32xf32>
    %19 = arith.mulf %18, %18 : vector<8x32xf32>
    %cst_10 = arith.constant dense<0.000000e+00> : vector<8xf32>
    %20 = vector.multi_reduction <add>, %19, %cst_10 [1] : vector<8x32xf32> to vector<8xf32>
    %21 = vector.shape_cast %20 : vector<8xf32> to vector<8x1xf32>
    %cst_11 = arith.constant 3.200000e+01 : f32
    %22 = vector.broadcast %cst_11 : f32 to vector<8x1xf32>
    %23 = arith.divf %21, %22 : vector<8x1xf32>
    %24 = vector.broadcast %16 : vector<8x1xf32> to vector<8x32xf32>
    %25 = arith.subf %4, %24 : vector<8x32xf32>
    %cst_12 = arith.constant 9.99999974E-6 : f32
    %26 = vector.broadcast %cst_12 : f32 to vector<8x1xf32>
    %27 = arith.addf %23, %26 : vector<8x1xf32>
    %28 = math.rsqrt %27 : vector<8x1xf32>
    %29 = vector.broadcast %28 : vector<8x1xf32> to vector<8x32xf32>
    %30 = arith.mulf %25, %29 : vector<8x32xf32>
    %31 = vector.shape_cast %10 : vector<32xf32> to vector<1x32xf32>
    %32 = vector.broadcast %31 : vector<1x32xf32> to vector<8x32xf32>
    %33 = arith.mulf %30, %32 : vector<8x32xf32>
    %34 = vector.shape_cast %12 : vector<32xf32> to vector<1x32xf32>
    %35 = vector.broadcast %34 : vector<1x32xf32> to vector<8x32xf32>
    %36 = arith.addf %33, %35 : vector<8x32xf32>
    %c0_13 = arith.constant 0 : index
    %c0_14 = arith.constant 0 : index
    %c0_15 = arith.constant 0 : index
    %37 = vector.load %arg4[%c0_13, %c0_14, %c0_15] : memref<1x32x96xf32, #tpu.memory_space<vmem>>, vector<1x32x96xf32>
    %38 = vector.shape_cast %37 : vector<1x32x96xf32> to vector<32x96xf32>
    %cst_16 = arith.constant dense<0.000000e+00> : vector<8x96xf32>
    %39 = tpu.matmul %36, %38, %cst_16 {dimension_numbers = #tpu.dot_dimension_numbers<[1], [0], [0], [1], [0, 0, 1, 1], [], []>} : vector<8x32xf32>, vector<32x96xf32>, vector<8x96xf32> -> vector<8x96xf32>
    %c0_17 = arith.constant 0 : index
    %c0_18 = arith.constant 0 : index
    %c0_19 = arith.constant 0 : index
    %40 = vector.load %arg5[%c0_17, %c0_18, %c0_19] : memref<1x1x96xf32, #tpu.memory_space<vmem>>, vector<1x1x96xf32>
    %41 = vector.shape_cast %40 : vector<1x1x96xf32> to vector<1x96xf32>
    %42 = vector.broadcast %41 : vector<1x96xf32> to vector<8x96xf32>
    %43 = arith.addf %39, %42 : vector<8x96xf32>
    %44 = tpu.transpose %43, [1, 0] : vector<8x96xf32> -> vector<96x8xf32>
    %45 = vector.shape_cast %44 : vector<96x8xf32> to vector<3x4x8x8xf32>
    %46 = vector.extract_strided_slice %45 {offsets = [0, 0, 0, 0], sizes = [1, 4, 8, 8], strides = [1, 1, 1, 1]} : vector<3x4x8x8xf32> to vector<1x4x8x8xf32>
    %47 = vector.shape_cast %46 : vector<1x4x8x8xf32> to vector<4x8x8xf32>
    %48 = vector.extract_strided_slice %45 {offsets = [1, 0, 0, 0], sizes = [1, 4, 8, 8], strides = [1, 1, 1, 1]} : vector<3x4x8x8xf32> to vector<1x4x8x8xf32>
    %49 = vector.shape_cast %48 : vector<1x4x8x8xf32> to vector<4x8x8xf32>
    %50 = vector.extract_strided_slice %45 {offsets = [2, 0, 0, 0], sizes = [1, 4, 8, 8], strides = [1, 1, 1, 1]} : vector<3x4x8x8xf32> to vector<1x4x8x8xf32>
    %51 = vector.shape_cast %50 : vector<1x4x8x8xf32> to vector<4x8x8xf32>
    "tpu.trace_start"() <{level = 10 : i32, message = "hdt,hds->hts"}> : () -> ()
    %cst_20 = arith.constant dense<0.000000e+00> : vector<4x8x8xf32>
    %52 = tpu.matmul %47, %49, %cst_20 {dimension_numbers = #tpu.dot_dimension_numbers<[1], [1], [2], [2], [0, 0, 0, 2, 1, 2], [0], [0]>} : vector<4x8x8xf32>, vector<4x8x8xf32>, vector<4x8x8xf32> -> vector<4x8x8xf32>
    "tpu.trace_stop"() : () -> ()
    %cst_21 = arith.constant 0.353553385 : f32
    %53 = vector.broadcast %cst_21 : f32 to vector<4x8x8xf32>
    %54 = arith.mulf %52, %53 : vector<4x8x8xf32>
    %cst_22 = arith.constant dense<0xFF800000> : vector<4x8xf32>
    %55 = vector.multi_reduction <maximumf>, %54, %cst_22 [2] : vector<4x8x8xf32> to vector<4x8xf32>
    %56 = vector.shape_cast %55 : vector<4x8xf32> to vector<4x8x1xf32>
    %57 = vector.broadcast %56 : vector<4x8x1xf32> to vector<4x8x8xf32>
    %58 = arith.subf %54, %57 : vector<4x8x8xf32>
    %59 = math.exp %58 : vector<4x8x8xf32>
    %cst_23 = arith.constant dense<0.000000e+00> : vector<4x8xf32>
    %60 = vector.multi_reduction <add>, %59, %cst_23 [2] : vector<4x8x8xf32> to vector<4x8xf32>
    %61 = vector.shape_cast %60 : vector<4x8xf32> to vector<4x8x1xf32>
    %62 = tpu.reciprocal %61 {approx = true} : vector<4x8x1xf32> -> vector<4x8x1xf32>
    %63 = vector.broadcast %62 : vector<4x8x1xf32> to vector<4x8x8xf32>
    %64 = arith.mulf %59, %63 : vector<4x8x8xf32>
    %65 = vector.shape_cast %64 : vector<4x8x8xf32> to vector<1x1x32x8xf32>
    %c0_24 = arith.constant 0 : index
    %c0_25 = arith.constant 0 : index
    %c0_26 = arith.constant 0 : index
    %c0_27 = arith.constant 0 : index
    %66 = vector.load %arg13[%c0_24, %c0_25, %c0_26, %c0_27] : memref<1x1x32x8xf32, #tpu.memory_space<vmem>>, vector<1x1x32x8xf32>
    tpu.vector_store %arg13[%c0_24, %c0_25, %c0_26, %c0_27], %65 {strides = array<i32>} : memref<1x1x32x8xf32, #tpu.memory_space<vmem>>, vector<1x1x32x8xf32>,
    "tpu.trace_start"() <{level = 10 : i32, message = "hts,hds->htd"}> : () -> ()
    %cst_28 = arith.constant dense<0.000000e+00> : vector<4x8x8xf32>
    %67 = tpu.matmul %64, %51, %cst_28 {dimension_numbers = #tpu.dot_dimension_numbers<[2], [2], [1], [1], [0, 0, 0, 1, 1, 1], [0], [0]>} : vector<4x8x8xf32>, vector<4x8x8xf32>, vector<4x8x8xf32> -> vector<4x8x8xf32>
    "tpu.trace_stop"() : () -> ()
    %68 = tpu.transpose %67, [0, 2, 1] : vector<4x8x8xf32> -> vector<4x8x8xf32>
    %69 = vector.shape_cast %68 : vector<4x8x8xf32> to vector<32x8xf32>
    %c0_29 = arith.constant 0 : index
    %c0_30 = arith.constant 0 : index
    %c0_31 = arith.constant 0 : index
    %70 = vector.load %arg6[%c0_29, %c0_30, %c0_31] : memref<1x32x32xf32, #tpu.memory_space<vmem>>, vector<1x32x32xf32>
    %71 = vector.shape_cast %70 : vector<1x32x32xf32> to vector<32x32xf32>
    "tpu.trace_start"() <{level = 10 : i32, message = "ct,cd->td"}> : () -> ()
    %cst_32 = arith.constant dense<0.000000e+00> : vector<8x32xf32>
    %72 = tpu.matmul %69, %71, %cst_32 {dimension_numbers = #tpu.dot_dimension_numbers<[0], [0], [1], [1], [0, 1, 1, 1], [], []>} : vector<32x8xf32>, vector<32x32xf32>, vector<8x32xf32> -> vector<8x32xf32>
    "tpu.trace_stop"() : () -> ()
    %73 = vector.extract_strided_slice %8 {offsets = [0, 0], sizes = [1, 32], strides = [1, 1]} : vector<2x32xf32> to vector<1x32xf32>
    %74 = vector.shape_cast %73 : vector<1x32xf32> to vector<32xf32>
    %75 = vector.shape_cast %74 : vector<32xf32> to vector<1x32xf32>
    %76 = vector.broadcast %75 : vector<1x32xf32> to vector<8x32xf32>
    %77 = arith.addf %72, %76 : vector<8x32xf32>
    %78 = arith.addf %4, %77 : vector<8x32xf32>
    %79 = vector.extract_strided_slice %6 {offsets = [2, 0], sizes = [1, 32], strides = [1, 1]} : vector<4x32xf32> to vector<1x32xf32>
    %80 = vector.shape_cast %79 : vector<1x32xf32> to vector<32xf32>
    %81 = vector.extract_strided_slice %6 {offsets = [3, 0], sizes = [1, 32], strides = [1, 1]} : vector<4x32xf32> to vector<1x32xf32>
    %82 = vector.shape_cast %81 : vector<1x32xf32> to vector<32xf32>
    %cst_33 = arith.constant dense<0.000000e+00> : vector<8xf32>
    %83 = vector.multi_reduction <add>, %78, %cst_33 [1] : vector<8x32xf32> to vector<8xf32>
    %84 = vector.shape_cast %83 : vector<8xf32> to vector<8x1xf32>
    %cst_34 = arith.constant 3.200000e+01 : f32
    %85 = vector.broadcast %cst_34 : f32 to vector<8x1xf32>
    %86 = arith.divf %84, %85 : vector<8x1xf32>
    %87 = vector.broadcast %86 : vector<8x1xf32> to vector<8x32xf32>
    %88 = arith.subf %78, %87 : vector<8x32xf32>
    %89 = arith.mulf %88, %88 : vector<8x32xf32>
    %cst_35 = arith.constant dense<0.000000e+00> : vector<8xf32>
    %90 = vector.multi_reduction <add>, %89, %cst_35 [1] : vector<8x32xf32> to vector<8xf32>
    %91 = vector.shape_cast %90 : vector<8xf32> to vector<8x1xf32>
    %cst_36 = arith.constant 3.200000e+01 : f32
    %92 = vector.broadcast %cst_36 : f32 to vector<8x1xf32>
    %93 = arith.divf %91, %92 : vector<8x1xf32>
    %94 = vector.broadcast %86 : vector<8x1xf32> to vector<8x32xf32>
    %95 = arith.subf %78, %94 : vector<8x32xf32>
    %cst_37 = arith.constant 9.99999974E-6 : f32
    %96 = vector.broadcast %cst_37 : f32 to vector<8x1xf32>
    %97 = arith.addf %93, %96 : vector<8x1xf32>
    %98 = math.rsqrt %97 : vector<8x1xf32>
    %99 = vector.broadcast %98 : vector<8x1xf32> to vector<8x32xf32>
    %100 = arith.mulf %95, %99 : vector<8x32xf32>
    %101 = vector.shape_cast %80 : vector<32xf32> to vector<1x32xf32>
    %102 = vector.broadcast %101 : vector<1x32xf32> to vector<8x32xf32>
    %103 = arith.mulf %100, %102 : vector<8x32xf32>
    %104 = vector.shape_cast %82 : vector<32xf32> to vector<1x32xf32>
    %105 = vector.broadcast %104 : vector<1x32xf32> to vector<8x32xf32>
    %106 = arith.addf %103, %105 : vector<8x32xf32>
    %c0_38 = arith.constant 0 : index
    %c0_39 = arith.constant 0 : index
    %c0_40 = arith.constant 0 : index
    %107 = vector.load %arg8[%c0_38, %c0_39, %c0_40] : memref<1x32x128xf32, #tpu.memory_space<vmem>>, vector<1x32x128xf32>
    %108 = vector.shape_cast %107 : vector<1x32x128xf32> to vector<32x128xf32>
    %cst_41 = arith.constant dense<0.000000e+00> : vector<8x128xf32>
    %109 = tpu.matmul %106, %108, %cst_41 {dimension_numbers = #tpu.dot_dimension_numbers<[1], [0], [0], [1], [0, 0, 1, 1], [], []>} : vector<8x32xf32>, vector<32x128xf32>, vector<8x128xf32> -> vector<8x128xf32>
    %c0_42 = arith.constant 0 : index
    %c0_43 = arith.constant 0 : index
    %c0_44 = arith.constant 0 : index
    %110 = vector.load %arg9[%c0_42, %c0_43, %c0_44] : memref<1x1x128xf32, #tpu.memory_space<vmem>>, vector<1x1x128xf32>
    %111 = vector.shape_cast %110 : vector<1x1x128xf32> to vector<1x128xf32>
    %112 = vector.broadcast %111 : vector<1x128xf32> to vector<8x128xf32>
    %113 = arith.addf %109, %112 : vector<8x128xf32>
    %cst_45 = arith.constant 0.000000e+00 : f32
    %114 = vector.broadcast %cst_45 : f32 to vector<8x128xf32>
    %115 = arith.maximumf %113, %114 : vector<8x128xf32>
    %c0_46 = arith.constant 0 : index
    %c0_47 = arith.constant 0 : index
    %c0_48 = arith.constant 0 : index
    %116 = vector.load %arg10[%c0_46, %c0_47, %c0_48] : memref<1x128x32xf32, #tpu.memory_space<vmem>>, vector<1x128x32xf32>
    %117 = vector.shape_cast %116 : vector<1x128x32xf32> to vector<128x32xf32>
    %cst_49 = arith.constant dense<0.000000e+00> : vector<8x32xf32>
    %118 = tpu.matmul %115, %117, %cst_49 {dimension_numbers = #tpu.dot_dimension_numbers<[1], [0], [0], [1], [0, 0, 1, 1], [], []>} : vector<8x128xf32>, vector<128x32xf32>, vector<8x32xf32> -> vector<8x32xf32>
    %119 = vector.extract_strided_slice %8 {offsets = [1, 0], sizes = [1, 32], strides = [1, 1]} : vector<2x32xf32> to vector<1x32xf32>
    %120 = vector.shape_cast %119 : vector<1x32xf32> to vector<32xf32>
    %121 = vector.shape_cast %120 : vector<32xf32> to vector<1x32xf32>
    %122 = vector.broadcast %121 : vector<1x32xf32> to vector<8x32xf32>
    %123 = arith.addf %118, %122 : vector<8x32xf32>
    %124 = arith.addf %78, %123 : vector<8x32xf32>
    %125 = vector.shape_cast %124 : vector<8x32xf32> to vector<1x8x32xf32>
    %c0_50 = arith.constant 0 : index
    %c0_51 = arith.constant 0 : index
    %c0_52 = arith.constant 0 : index
    %126 = vector.load %arg14[%c0_50, %c0_51, %c0_52] : memref<1x8x32xf32, #tpu.memory_space<vmem>>, vector<1x8x32xf32>
    tpu.vector_store %arg14[%c0_50, %c0_51, %c0_52], %125 {strides = array<i32>} : memref<1x8x32xf32, #tpu.memory_space<vmem>>, vector<1x8x32xf32>,
    %c1_i32 = arith.constant 1 : i32
    %127 = arith.cmpi eq, %arg1, %c1_i32 : i32
    %128 = arith.extui %127 : i1 to i32
    %c0_i32_53 = arith.constant 0 : i32
    %129 = arith.cmpi ne, %128, %c0_i32_53 : i32
    scf.if %129 {
      %c0_54 = arith.constant 0 : index
      %c0_55 = arith.constant 0 : index
      %130 = vector.load %arg11[%c0_54, %c0_55] : memref<2x32xf32, #tpu.memory_space<vmem>>, vector<2x32xf32>
      %131 = vector.extract_strided_slice %130 {offsets = [0, 0], sizes = [1, 32], strides = [1, 1]} : vector<2x32xf32> to vector<1x32xf32>
      %132 = vector.shape_cast %131 : vector<1x32xf32> to vector<32xf32>
      %133 = vector.extract_strided_slice %130 {offsets = [1, 0], sizes = [1, 32], strides = [1, 1]} : vector<2x32xf32> to vector<1x32xf32>
      %134 = vector.shape_cast %133 : vector<1x32xf32> to vector<32xf32>
      %cst_56 = arith.constant dense<0.000000e+00> : vector<8xf32>
      %135 = vector.multi_reduction <add>, %124, %cst_56 [1] : vector<8x32xf32> to vector<8xf32>
      %136 = vector.shape_cast %135 : vector<8xf32> to vector<8x1xf32>
      %cst_57 = arith.constant 3.200000e+01 : f32
      %137 = vector.broadcast %cst_57 : f32 to vector<8x1xf32>
      %138 = arith.divf %136, %137 : vector<8x1xf32>
      %139 = vector.broadcast %138 : vector<8x1xf32> to vector<8x32xf32>
      %140 = arith.subf %124, %139 : vector<8x32xf32>
      %141 = arith.mulf %140, %140 : vector<8x32xf32>
      %cst_58 = arith.constant dense<0.000000e+00> : vector<8xf32>
      %142 = vector.multi_reduction <add>, %141, %cst_58 [1] : vector<8x32xf32> to vector<8xf32>
      %143 = vector.shape_cast %142 : vector<8xf32> to vector<8x1xf32>
      %cst_59 = arith.constant 3.200000e+01 : f32
      %144 = vector.broadcast %cst_59 : f32 to vector<8x1xf32>
      %145 = arith.divf %143, %144 : vector<8x1xf32>
      %146 = vector.broadcast %138 : vector<8x1xf32> to vector<8x32xf32>
      %147 = arith.subf %124, %146 : vector<8x32xf32>
      %cst_60 = arith.constant 9.99999974E-6 : f32
      %148 = vector.broadcast %cst_60 : f32 to vector<8x1xf32>
      %149 = arith.addf %145, %148 : vector<8x1xf32>
      %150 = math.rsqrt %149 : vector<8x1xf32>
      %151 = vector.broadcast %150 : vector<8x1xf32> to vector<8x32xf32>
      %152 = arith.mulf %147, %151 : vector<8x32xf32>
      %153 = vector.shape_cast %132 : vector<32xf32> to vector<1x32xf32>
      %154 = vector.broadcast %153 : vector<1x32xf32> to vector<8x32xf32>
      %155 = arith.mulf %152, %154 : vector<8x32xf32>
      %156 = vector.shape_cast %134 : vector<32xf32> to vector<1x32xf32>
      %157 = vector.broadcast %156 : vector<1x32xf32> to vector<8x32xf32>
      %158 = arith.addf %155, %157 : vector<8x32xf32>
      %cst_61 = arith.constant dense<0.000000e+00> : vector<32xf32>
      %159 = vector.multi_reduction <add>, %158, %cst_61 [0] : vector<8x32xf32> to vector<32xf32>
      %160 = vector.shape_cast %159 : vector<32xf32> to vector<1x32xf32>
      %cst_62 = arith.constant 8.000000e+00 : f32
      %161 = vector.broadcast %cst_62 : f32 to vector<1x32xf32>
      %162 = arith.divf %160, %161 : vector<1x32xf32>
      %163 = vector.shape_cast %162 : vector<1x32xf32> to vector<1x1x32xf32>
      %c0_63 = arith.constant 0 : index
      %c0_64 = arith.constant 0 : index
      %c0_65 = arith.constant 0 : index
      %164 = vector.load %arg12[%c0_63, %c0_64, %c0_65] : memref<1x1x32xf32, #tpu.memory_space<vmem>>, vector<1x1x32xf32>
      tpu.vector_store %arg12[%c0_63, %c0_64, %c0_65], %163 {strides = array<i32>} : memref<1x1x32xf32, #tpu.memory_space<vmem>>, vector<1x1x32xf32>,
    } else {
    }
    return
  }
  func.func @transform_0(%arg0: i32, %arg1: i32) -> (i32, i32, i32) {
    %c0_i32 = arith.constant 0 : i32
    %c0_i32_0 = arith.constant 0 : i32
    %c0_i32_1 = arith.constant 0 : i32
    return %arg0, %c0_i32, %c0_i32_0 : i32, i32, i32
  }
  func.func @transform_1(%arg0: i32, %arg1: i32) -> (i32, i32, i32) {
    %c0_i32 = arith.constant 0 : i32
    %c0_i32_0 = arith.constant 0 : i32
    %c0_i32_1 = arith.constant 0 : i32
    return %arg1, %c0_i32, %c0_i32_0 : i32, i32, i32
  }
  func.func @transform_2(%arg0: i32, %arg1: i32) -> (i32, i32, i32) {
    %c0_i32 = arith.constant 0 : i32
    %c0_i32_0 = arith.constant 0 : i32
    %c0_i32_1 = arith.constant 0 : i32
    return %arg1, %c0_i32, %c0_i32_0 : i32, i32, i32
  }
  func.func @transform_3(%arg0: i32, %arg1: i32) -> (i32, i32, i32) {
    %c0_i32 = arith.constant 0 : i32
    %c0_i32_0 = arith.constant 0 : i32
    %c0_i32_1 = arith.constant 0 : i32
    return %arg1, %c0_i32, %c0_i32_0 : i32, i32, i32
  }
  func.func @transform_4(%arg0: i32, %arg1: i32) -> (i32, i32, i32) {
    %c0_i32 = arith.constant 0 : i32
    %c0_i32_0 = arith.constant 0 : i32
    %c0_i32_1 = arith.constant 0 : i32
    return %arg1, %c0_i32, %c0_i32_0 : i32, i32, i32
  }
  func.func @transform_5(%arg0: i32, %arg1: i32) -> (i32, i32, i32) {
    %c0_i32 = arith.constant 0 : i32
    %c0_i32_0 = arith.constant 0 : i32
    %c0_i32_1 = arith.constant 0 : i32
    return %arg1, %c0_i32, %c0_i32_0 : i32, i32, i32
  }
  func.func @transform_6(%arg0: i32, %arg1: i32) -> (i32, i32, i32) {
    %c0_i32 = arith.constant 0 : i32
    %c0_i32_0 = arith.constant 0 : i32
    %c0_i32_1 = arith.constant 0 : i32
    return %arg1, %c0_i32, %c0_i32_0 : i32, i32, i32
  }
  func.func @transform_7(%arg0: i32, %arg1: i32) -> (i32, i32, i32) {
    %c0_i32 = arith.constant 0 : i32
    %c0_i32_0 = arith.constant 0 : i32
    %c0_i32_1 = arith.constant 0 : i32
    return %arg1, %c0_i32, %c0_i32_0 : i32, i32, i32
  }
  func.func @transform_8(%arg0: i32, %arg1: i32) -> (i32, i32, i32) {
    %c0_i32 = arith.constant 0 : i32
    %c0_i32_0 = arith.constant 0 : i32
    %c0_i32_1 = arith.constant 0 : i32
    return %arg1, %c0_i32, %c0_i32_0 : i32, i32, i32
  }
  func.func @transform_9(%arg0: i32, %arg1: i32) -> (i32, i32) {
    %c0_i32 = arith.constant 0 : i32
    %c0_i32_0 = arith.constant 0 : i32
    %c0_i32_1 = arith.constant 0 : i32
    return %c0_i32, %c0_i32_0 : i32, i32
  }
  func.func @transform_10(%arg0: i32, %arg1: i32) -> (i32, i32, i32) {
    %c0_i32 = arith.constant 0 : i32
    %c0_i32_0 = arith.constant 0 : i32
    %c0_i32_1 = arith.constant 0 : i32
    return %arg0, %c0_i32, %c0_i32_0 : i32, i32, i32
  }
  func.func @transform_11(%arg0: i32, %arg1: i32) -> (i32, i32, i32, i32) {
    %c0_i32 = arith.constant 0 : i32
    %c0_i32_0 = arith.constant 0 : i32
    %c0_i32_1 = arith.constant 0 : i32
    return %arg1, %arg0, %c0_i32, %c0_i32_0 : i32, i32, i32, i32
  }
}

</mosaic_0001>

<bundles_post_ra>
// kernel: transformer_encoder_forward.1
= control target key start
LH: loop header
LB: loop body
LE: loop exit
PB: predicated region body
PF: predicated region fallthrough
CT: control target
= control target key end

     0   :  { %s3046_s0 = inlined_call_operand.vmem [shape: f32[2,8,32], index: 0, kind: input, shape index: {}]   ;;  %s3047_s1 = inlined_call_operand.vmem [shape: f32[2,4,32], index: 1, kind: input, shape index: {}]   ;;  %s3048_s2 = inlined_call_operand.vmem [shape: f32[2,32,96], index: 2, kind: input, shape index: {}]   ;;  %s3049_s3 = inlined_call_operand.vmem [shape: f32[2,1,96], index: 3, kind: input, shape index: {}]   ;;  %s3050_s4 = inlined_call_operand.vmem [shape: f32[2,32,32], index: 4, kind: input, shape index: {}]   ;;  %s3051_s5 = inlined_call_operand.vmem [shape: f32[2,2,32], index: 5, kind: input, shape index: {}]   ;;  %s3052_s6 = inlined_call_operand.vmem [shape: f32[2,32,128], index: 6, kind: input, shape index: {}]   ;;  %s3053_s7 = inlined_call_operand.vmem [shape: f32[2,1,128], index: 7, kind: input, shape index: {}]   ;;  %s3054_s8 = inlined_call_operand.vmem [shape: f32[2,128,32], index: 8, kind: input, shape index: {}]   ;;  %s3055_s9 = inlined_call_operand.vmem [shape: f32[2,32], index: 9, kind: input, shape index: {}]   ;;  %s3056_s10 = inlined_call_operand.hbm [shape: f32[2,1,32], index: 10, kind: output, shape index: {0}]   ;;  %s3057_s11 = inlined_call_operand.vmem [shape: f32[2,2,32,8], index: 11, kind: output, shape index: {1}]  }
   0x1   :  { %3070 = sst [smem:[#allocation17_spill]] %s3046_s0 }
   0x2   :  { %3071 = sst [smem:[#allocation18_spill]] %s3047_s1 }
   0x3   :  { %3072 = sst [smem:[#allocation19_spill]] %s3048_s2 }
   0x4   :  { %3073 = sst [smem:[#allocation20_spill]] %s3050_s4 }
   0x5   :  { %3074 = sst [smem:[#allocation21_spill]] %s3051_s5 }
   0x6   :  { %3075 = sst [smem:[#allocation22_spill]] %s3055_s9 }
   0x7   :  { %3076 = sst [smem:[#allocation23_spill]] %s3056_s10 }
   0x8   :  { %17 = vsyncpa [#allocation4], 0 }
   0x9   :  { %19 = vsyncpa [#allocation4 + $0x1], 0  ;;  %s2688_s17 = smov 0   ;;  %s2690_s18 = smov 0  }
   0xa   :  { %s2692_s19 = smov 0   ;;  %s2694_s20 = smov 0  }
   0xb   :  { %s2696_s21 = smov 0   ;;  %s2698_s22 = smov 0  }
   0xc   :  { %s2700_s23 = smov 0   ;;  %s2702_s24 = smov 0  }
   0xd LB: > { %3077 = sst [smem:[#allocation6_spill]] %s2594_s17  ;;  %s2189_s25 = sadd.s32 4294967295, %s2622_s24   ;;  %s2622_s24 = sphi %s2702_s24, %s25_s24   ;;  %s2618_s23 = sphi %s2700_s23, %s3111_s23   ;;  %s2614_s22 = sphi %s2698_s22, %s3110_s22   ;;  %s2610_s21 = sphi %s2696_s21, %s3109_s21   ;;  %s2606_s20 = sphi %s2694_s20, %s3108_s20   ;;  %s2602_s19 = sphi %s2692_s19, %s3107_s19   ;;  %s2598_s18 = sphi %s2690_s18, %s3113_s18   ;;  %s2594_s17 = sphi %s2688_s17, %s3112_s17  }
   0xe   : > { %3078 = sst [smem:[#allocation7_spill]] %s2602_s19  ;;  %s2190_s26 = sadd.s32 4294967294, %s2622_s24  }
   0xf   : > { %3079 = sst [smem:[#allocation8_spill]] %s2610_s21  ;;  %s34_s27 = sadd.s32 1, %s2614_s22 }
  0x10   : > { %3080 = sst [smem:[#allocation9_spill]] %s2614_s22  ;;  %p35_p0 = scmp.ge.s32.totalorder %s34_s27, 2 }
  0x11   : > { %3081 = sst [smem:[#allocation10_spill]] %s2618_s23  ;;  %s37_s28 = sadd.s32 1, %s2618_s23 }
  0x12   : > { %3082 = sst [smem:[#allocation11_spill]] %s2622_s24  ;;  %p309_p1 = scmp.ne.s32.totalorder %s2602_s19, %s2598_s18 }
  0x13   : > { %p310_p2 = scmp.eq.s32.totalorder %s2189_s25, 3  ;;  %s3115_s27 = smov (%p35_p0, %s34_s27), 0 }
  0x14   : > { %3083 = sst [smem:[#allocation12_spill]] %s3115_s27  ;;  %s3117_s28 = smov (!%p35_p0, %s37_s28), %s2618_s23 }
  0x15   : > { %p2737_p3 = por %p310_p2, %p309_p1  ;;  %p315_p4 = scmp.ne.s32.totalorder %s2598_s18, %s2594_s17 }
  0x16   : > { %p39_p5 = scmp.ge.s32.totalorder %s3117_s28, 2  ;;  %p316_p6 = scmp.eq.s32.totalorder %s2190_s26, 3 }
  0x17   : > { %s3084_s29 = scalar_select %p2737_p3, 1, 0 }
  0x18   : > { %p2193_p7 = scmp.ge.s32.totalorder %s2622_s24, 1  ;;  %p430_p8 = scmp.lt.s32.totalorder %s2622_s24, 5 }
  0x19   : > { %3085 = sst [smem:[#allocation13_spill]] %s3084_s29  ;;  %s3119_s28 = smov (%p39_p5, %s3117_s28), 0 }
  0x1a   : > { %3086 = sst [smem:[#allocation14_spill]] %s3119_s28  ;;  %p2747_p9 = por %p316_p6, %p315_p4 }
  0x1b   : > { %p431_p10 = pnand %p2193_p7, %p430_p8  ;;  %s296_s12 = ssub.s32 %s2618_s23, %s3119_s28 }
  0x1c   : > { %s3087_s30 = scalar_select %p2747_p9, 1, 0 }
  0x1d   : > { %s299_s13 = sadd.s32 1, %s2602_s19  ;;  %p297_p11 = scmp.eq.s32.totalorder %s296_s12, 0 }
  0x1e   : > { %3088 = sst [smem:[#allocation15_spill]] %s3087_s30  ;;  %434 = sbr.rel (%p431_p10) target bundleno = 3157 (0xc55), region = 60 }
  0x1f   : > { %s2755_s14 = scalar_select %p297_p11, %s2602_s19, %s299_s13  }
  0x20   : > { %p511_p12 = scmp.lt.s32.totalorder (!%p431_p10), %s2610_s21, 1  ;;  %p515_p13 = scmp.lt.s32.totalorder (!%p431_p10), %s2606_s20, 1 }
  0x21   : > { %3089 = sst [smem:[#allocation16_spill]] %s2755_s14  ;;  %s3090_s0 = sld [smem:[#allocation17_spill]] (!%p431_p10) }
  0x22   : > { %s3091_s1 = sld [smem:[#allocation18_spill]] (!%p431_p10)  ;;  %s3092_s2 = sld [smem:[#allocation19_spill]] (!%p431_p10) }
  0x23   : > { %s3093_s4 = sld [smem:[#allocation20_spill]] (!%p431_p10)  ;;  %s3094_s5 = sld [smem:[#allocation21_spill]] (!%p431_p10) }
  0x24   : > { %p2208_p0 = scmp.ne.s32.totalorder (!%p431_p10), %s2606_s20, 0 }
  0x25   : > { %s512_s16 = scalar_select %p511_p12, %s2610_s21, 1 }
  0x26   : > { %s2762_s25 = scalar_select %p515_p13, %s2606_s20, 1 }
  0x27   : > { %s2194_s26 = sshll.u32 %s512_s16, 3  ;;  %s2205_s12 = sshll.u32 %s512_s16, 2  ;;  %vm563_vm0 = vcmask (!%p2208_p0), 261120  }
  0x28   : > { %s514_s27 = scalar_lea.vmem %s3090_s0, %s2194_s26  ;;  %s2195_s23 = sshll.u32 %s2762_s25, 2 }
  0x29   : > { %s2771_s14 = scalar_lea.vmem %s3091_s1, %s2195_s23  ;;  %s2230_s19 = sshll.u32 %s2762_s25, 5  ;;  %v562_v0 = vld [vmem:[%s514_s27] sm:$0xff] (!%p2208_p0) }
  0x2a   : > { %s2777_s24 = scalar_lea.vmem %s3092_s2, %s2230_s19  ;;  %s2786_s26 = scalar_lea.vmem %s3093_s4, %s2230_s19  ;;  %564 = vst.msk [vmem:[#allocation2] sm:$0xff] (!%p2208_p0), %vm563_vm0, %v562_v0 }
  0x2b   : > { %s2200_s13 = sshll.u32 %s2762_s25, 1  ;;  %s2797_s17 = scalar_lea.vmem %s3052_s6, %s2230_s19 }
  0x2c   : > { %s2792_s23 = scalar_lea.vmem %s3094_s5, %s2200_s13  ;;  %s543_s10 = scalar_lea.vmem %s3053_s7, %s2762_s25 }
  0x2d   : > { %s2233_s29 = sshll.u32 %s2762_s25, 7  ;;  %s2206_s4 = sshll.u32 %s2762_s25, 3 }
  0x2e   : > { %s2807_s28 = scalar_lea.vmem %s3054_s8, %s2233_s29  ;;  %s555_s9 = sadd.s32 %s2206_s4, %s2205_s12 }
  0x2f   : > { %s2207_s22 = sshll.u32 %s555_s9, 3  ;;  %s3095_s0 = sand.u32 1, %s2598_s18  }
  0x30   : > { %s2813_s5 = scalar_lea.vmem %s3057_s11, %s2207_s22  ;;  %s2817_s1 = scalar_lea.vmem [#allocation3], %s3095_s0 }
  0x31   : > { %561 = sbr.rel (%p2208_p0) target bundleno = 56 (0x38), region = 64 }
  0x38 PF: > { %v2820_v1 = vld [vmem:[#allocation2] sm:$0xff]  ;;  %vm568_vm1 = vcmask 261120   ;;  %v594_v9 = vld [vmem:[%s2777_s24 + $0x8] sm:$0xff]  ;;  %v595_v10 = vld [vmem:[%s2777_s24 + $0x10] sm:$0xff]  ;;  %v2624_v11 = vmov 0.0|0.0   ;;  %vm2625_vm2 = vmmov 0   ;;  %v583_v18 = vlaneseq  ;;  %s3096_s9 = scalar_lea.vmem %s3049_s3, %s2762_s25 }
  0x39   : > { %v569_v2 = vsel %vm568_vm1, %v2820_v1, 0.0  ;;  %v593_v8 = vld [vmem:[%s2777_s24] sm:$0xff]  ;;  %2390 = vmatprep.subr.bf16.mxu0 %v2624_v11  ;;  %v596_v13 = vld [vmem:[%s2777_s24 + $0x18] sm:$0xff]  ;;  %v2626_v14 = vmov 0.0   ;;  %vm741_vm3 = vcmask 64512   ;;  %p2226_p1 = scmp.ne.s32.totalorder %s2606_s20, 1 }
  0x3a   : > { %570 = vadd.xlane.f32.xlu0 %v569_v2  ;;  %v2391_v12 = vpack.c.bf16 %v594_v9, %v593_v8  ;;  %2290 = vmatprep.mubr.msk.f32.mxu0 %vm2625_vm2, %v2626_v14  ;;  %v2394_v15 = vpack.c.bf16 %v596_v13, %v595_v10  ;;  %v2838_v20 = vshrl.u32 %v583_v18, 7  ;;  %v2844_v22 = vld [vmem:[%s2771_s14] sm:$0xf]  ;;  %s3097_s14 = sld [smem:[#allocation22_spill]] (!%p2226_p1)  ;;  %vm1965_vm4 = vcmask (!%p2226_p1), 253952  }
  0x3b   : > { %2303 = vmatprep.subr.mxu1 %v2626_v14  ;;  %2305 = vmatprep.mubr.msk.f32.mxu1 %vm2625_vm2, %v2626_v14  ;;  %v2209_v30 = vld [vmem:[%s3096_s9] ss:$0 sm:$0xff] }
  0x3c   : > { %2392 = vmatpush3.bf16.msra.mxu0 %v2391_v12  ;;  %v2841_v21 = vsub.s32 0, %v2838_v20  ;;  %v2847_v23 = vsub.s32 1, %v2838_v20 }
  0x3d   : > { %2393 = vmatprep.subr.bf16.mxu0 %v2624_v11 }
  0x3e   : > { %v586_v24 = vrot.slane %v2844_v22, %v2841_v21  ;;  %v591_v27 = vrot.slane %v2844_v22, %v2847_v23 }
  0x40   : > { %2395 = vmatpush3.bf16.msra.mxu0 %v2394_v15 }
  0x41   : > { %2293 = vmatprep.subr.mxu0 %v2626_v14 }
  0xc7   : > { %v571_v3 = vpop.xlane.xlu0 %570 }
  0xc8   : > { %v573_v4 = vmul.f32 0.03125, %v571_v3 }
  0xca   : > { %v574_v5 = vsub.f32 %v2820_v1, %v573_v4 }
  0xcc   : > { %v575_v6 = vmul.f32 %v574_v5, %v574_v5 }
  0xce   : > { %v576_v7 = vsel %vm568_vm1, %v575_v6, 0.0 }
  0xcf   : > { %577 = vadd.xlane.f32.xlu0 %v576_v7 }
 0x15c   : > { %v578_v16 = vpop.xlane.xlu0 %577 }
 0x15d   : > { %v579_v17 = vmul.f32 0.03125, %v578_v16 }
 0x15f   : > { %v580_v19 = vadd.f32 1e-05, %v579_v17 }
 0x161   : > { %2506 = vrsqrt.f32 %v580_v19 }
 0x16b   : > { %v2507_v25 = vpop.eup %2506 }
 0x16c   : > { %v582_v26 = vmul.f32 %v2507_v25, %v574_v5 }
 0x16e   : > { %v587_v28 = vmul.f32 %v586_v24, %v582_v26 }
 0x170   : > { %v592_v29 = vadd.f32 %v591_v27, %v587_v28 }
 0x172   : > { %2291 = vmatmul.mubr.msk.f32.vlgmr.msra.gmra.mrb[0].mxu0 %vm568_vm1, %v592_v29 }
 0x173   : > { %2295 = vmatprep.mubr.msk.f32.mxu0 %vm2625_vm2, %v2626_v14 }
 0x245   : > { %v673_v31 = vpop.f32.mrb[0].mxu0 }
 0x246   : > { %v2292_v32 = vpop.f32.mrb[1].mxu0  ;;  %v674_v33 = vadd.f32 %v2209_v30, %v673_v31 }
 0x248   : > { %677 = vxpose.xlu1.b32.start.end [1/1] (short) (narrow) %v674_v33, 96 }
 0x2c8   : > { %v693_v34 = vpop.trf.xlu1 }
 0x2c9   : > { %709 = vxpose.xlu1.b32.start.end [1/1] (short) (narrow) %v693_v34, 8 }
 0x2cc   : > { %v694_v35 = vpop.trf.xlu1 }
 0x2cd   : > { %815 = vxpose.xlu0.b32.start.end [1/1] (short) (narrow) %v694_v35, 8 }
 0x2d0   : > { %v695_v36 = vpop.trf.xlu1 }
 0x2d1   : > { %920 = vxpose.xlu1.b32.start.end [1/1] (short) (narrow) %v695_v36, 8 }
 0x2d4   : > { %v696_v37 = vpop.trf.xlu1 }
 0x2d5   : > { %1025 = vxpose.xlu0.b32.start.end [1/1] (short) (narrow) %v696_v37, 8 }
 0x2d8   : > { %v697_v38 = vpop.trf.xlu1 }
 0x2d9   : > { %2294 = vmatpush3.msra.mxu0 %v697_v38 }
 0x2da   : > { %2298 = vmatprep.subr.mxu0 %v2626_v14 }
 0x2dc   : > { %v698_v39 = vpop.trf.xlu1 }
 0x2e0   : > { %v699_v40 = vpop.trf.xlu1 }
 0x2e1   : > { %2304 = vmatpush3.msra.mxu1 %v699_v40 }
 0x2e2   : > { %2313 = vmatprep.subr.mxu1 %v2626_v14 }
 0x2e4   : > { %v700_v41 = vpop.trf.xlu1 }
 0x2e8   : > { %v701_v42 = vpop.trf.xlu1 }
 0x2ec   : > { %v702_v43 = vpop.trf.xlu1 }
 0x2f0   : > { %v2863_v44 = vpop.trf.xlu1 }
 0x2f4   : > { %v2865_v45 = vpop.trf.xlu1 }
 0x349   : > { %v725_v46 = vpop.trf.xlu1 }
 0x34a   : > { %2296 = vmatmul.mubr.msk.f32.vlgmr.msra.gmra.mrb[2].mxu0 %vm741_vm3, %v725_v46 }
 0x34b   : > { %2299 = vmatpush3.msra.mxu0 %v698_v39  ;;  %2300 = vmatprep.mubr.msk.f32.mxu0 %vm2625_vm2, %v2626_v14 }
 0x34c   : > { %2308 = vmatprep.subr.mxu0 %v2626_v14 }
 0x34d   : > { %v831_v47 = vpop.trf.xlu0 }
 0x34e   : > { %2301 = vmatmul.mubr.msk.f32.vlgmr.msra.gmra.mrb[4].mxu0 %vm741_vm3, %v831_v47 }
 0x34f   : > { %2309 = vmatpush3.msra.mxu0 %v700_v41  ;;  %2310 = vmatprep.mubr.msk.f32.mxu0 %vm2625_vm2, %v2626_v14 }
 0x350   : > { %2318 = vmatprep.subr.mxu0 %v2626_v14 }
 0x351   : > { %v936_v48 = vpop.trf.xlu1 }
 0x352   : > { %2306 = vmatmul.mubr.msk.f32.vlgmr.msra.gmra.mrb[0].mxu1 %vm741_vm3, %v936_v48 }
 0x353   : > { %2314 = vmatpush3.xpose.msk.msra.mxu1 %vm741_vm3, %v701_v42  ;;  %2315 = vmatprep.mubr.msk.f32.mxu1 %vm2625_vm2, %v2626_v14 }
 0x354   : > { %2323 = vmatprep.subr.mxu1 %v2626_v14 }
 0x355   : > { %v1041_v49 = vpop.trf.xlu0 }
 0x356   : > { %2311 = vmatmul.mubr.msk.f32.vlgmr.msra.gmra.mrb[6].mxu0 %vm741_vm3, %v1041_v49  ;;  %v1614_v49 = vld [vmem:[%s2786_s26] sm:$0xff] }
 0x357   : > { %2319 = vmatpush3.xpose.msk.msra.mxu0 %vm741_vm3, %v702_v43  ;;  %2320 = vmatprep.mubr.msk.f32.mxu0 %vm2625_vm2, %v2626_v14 }
 0x358   : > { %2328 = vmatprep.subr.mxu0 %v2626_v14 }
 0x41d   : > { %v811_v50 = vpop.f32.mrb[2].mxu0 }
 0x41e   : > { %v1130_v51 = vmul.f32 0.35355338, %v811_v50  ;;  %v2297_v52 = vpop.f32.mrb[3].mxu0  ;;  %v1615_v50 = vld [vmem:[%s2786_s26 + $0x8] sm:$0xff] }
 0x41f   : > { %v2397_v52 = vpack.c.bf16 %v1615_v50, %v1614_v49 }
 0x420   : > { %v1134_v53 = vsel %vm741_vm3, %v1130_v51, -inf }
 0x421   : > { %1135 = vmax.xlane.f32.xlu1 %v1134_v53  ;;  %v916_v54 = vpop.f32.mrb[4].mxu0  ;;  %v1617_v53 = vld [vmem:[%s2786_s26 + $0x18] sm:$0xff] }
 0x422   : > { %v1131_v55 = vmul.f32 0.35355338, %v916_v54  ;;  %v2302_v56 = vpop.f32.mrb[5].mxu0 }
 0x424   : > { %v1137_v57 = vsel %vm741_vm3, %v1131_v55, -inf }
 0x425   : > { %v1021_v58 = vpop.f32.mrb[0].mxu1  ;;  %1138 = vmax.xlane.f32.xlu0 %v1137_v57 }
 0x426   : > { %v1132_v59 = vmul.f32 0.35355338, %v1021_v58  ;;  %v2307_v60 = vpop.f32.mrb[1].mxu1 }
 0x427   : > { %v2929_v60 = vld [vmem:[%s2792_s23] sm:$0x3] }
 0x428   : > { %v1140_v61 = vsel %vm741_vm3, %v1132_v59, -inf }
 0x429   : > { %1141 = vmax.xlane.f32.xlu1 %v1140_v61  ;;  %v1126_v62 = vpop.f32.mrb[6].mxu0  ;;  %v1621_v61 = vrot.slane %v2929_v60, %v2841_v21 }
 0x42a   : > { %v1133_v63 = vmul.f32 0.35355338, %v1126_v62  ;;  %v2312_v0 = vpop.f32.mrb[7].mxu0 }
 0x42c   : > { %v1143_v2 = vsel %vm741_vm3, %v1133_v63, -inf }
 0x42d   : > { %1144 = vmax.xlane.f32.xlu1 %v1143_v2 }
 0x4ae   : > { %v1136_v3 = vpop.xlane.xlu1 %1135 }
 0x4af   : > { %v1146_v4 = vsub.f32 %v1130_v51, %v1136_v3  ;;  %v1616_v51 = vld [vmem:[%s2786_s26 + $0x10] sm:$0xff] }
 0x4b0   : > { %v2400_v54 = vpack.c.bf16 %v1617_v53, %v1616_v51  ;;  %v1851_v51 = vld [vmem:[%s2807_s28 + $0x78] sm:$0xff]  ;;  %v2224_v53 = vld [vmem:[%s543_s10] ss:$0 sm:$0xff] }
 0x4b1   : > { %v1150_v5 = vmul.f32 1.442695, %v1146_v4 }
 0x4b2   : > { %v1139_v6 = vpop.xlane.xlu0 %1138 }
 0x4b3   : > { %2508 = vpow2.f32 %v1150_v5  ;;  %v1147_v7 = vsub.f32 %v1131_v55, %v1139_v6 }
 0x4b5   : > { %v1152_v8 = vmul.f32 1.442695, %v1147_v7 }
 0x4b6   : > { %v1142_v9 = vpop.xlane.xlu1 %1141 }
 0x4b7   : > { %2510 = vpow2.f32 %v1152_v8  ;;  %v1148_v10 = vsub.f32 %v1132_v59, %v1142_v9  ;;  %v1751_v8 = vld [vmem:[%s2797_s17] sm:$0xff]  ;;  %v1752_v9 = vld [vmem:[%s2797_s17 + $0x8] sm:$0xff] }
 0x4b9   : > { %v1154_v12 = vmul.f32 1.442695, %v1148_v10  ;;  %v1753_v10 = vld [vmem:[%s2797_s17 + $0x10] sm:$0xff] }
 0x4ba   : > { %v1145_v13 = vpop.xlane.xlu1 %1144 }
 0x4bb   : > { %2512 = vpow2.f32 %v1154_v12  ;;  %v1149_v15 = vsub.f32 %v1133_v63, %v1145_v13  ;;  %v1754_v12 = vld [vmem:[%s2797_s17 + $0x18] sm:$0xff] }
 0x4bc   : > { %v2406_v13 = vpack.c.bf16 %v1754_v12, %v1753_v10 }
 0x4bd   : > { %v2509_v16 = vpop.eup %2508  ;;  %v1156_v17 = vmul.f32 1.442695, %v1149_v15  ;;  %v1836_v15 = vld [vmem:[%s2807_s28] sm:$0xff] }
 0x4be   : > { %v1158_v18 = vsel %vm741_vm3, %v2509_v16, 0.0 }
 0x4bf   : > { %2514 = vpow2.f32 %v1156_v17  ;;  %1159 = vadd.xlane.f32.xlu1 %v1158_v18  ;;  %v1838_v17 = vld [vmem:[%s2807_s28 + $0x10] sm:$0xff] }
 0x4c1   : > { %v2511_v19 = vpop.eup %2510 }
 0x4c2   : > { %v1161_v24 = vsel %vm741_vm3, %v2511_v19, 0.0 }
 0x4c3   : > { %1162 = vadd.xlane.f32.xlu0 %v1161_v24 }
 0x4c5   : > { %v2513_v25 = vpop.eup %2512 }
 0x4c6   : > { %v1164_v26 = vsel %vm741_vm3, %v2513_v25, 0.0 }
 0x4c7   : > { %1165 = vadd.xlane.f32.xlu1 %v1164_v26  ;;  %v1841_v26 = vld [vmem:[%s2807_s28 + $0x28] sm:$0xff] }
 0x4c9   : > { %v2515_v27 = vpop.eup %2514 }
 0x4ca   : > { %v1167_v28 = vsel %vm741_vm3, %v2515_v27, 0.0 }
 0x4cb   : > { %1168 = vadd.xlane.f32.xlu0 %v1167_v28  ;;  %v1842_v28 = vld [vmem:[%s2807_s28 + $0x30] sm:$0xff] }
 0x54c   : > { %v1160_v29 = vpop.xlane.xlu1 %1159 }
 0x54d   : > { %2516 = vrcp.f32 %v1160_v29  ;;  %v1843_v29 = vld [vmem:[%s2807_s28 + $0x38] sm:$0xff] }
 0x550   : > { %v1163_v30 = vpop.xlane.xlu0 %1162 }
 0x551   : > { %2518 = vrcp.f32 %v1163_v30  ;;  %v2418_v30 = vpack.c.bf16 %v1843_v29, %v1842_v28 }
 0x554   : > { %v1166_v31 = vpop.xlane.xlu1 %1165 }
 0x555   : > { %2520 = vrcp.f32 %v1166_v31  ;;  %v1844_v31 = vld [vmem:[%s2807_s28 + $0x40] sm:$0xff] }
 0x557   : > { %v2517_v32 = vpop.eup %2516 }
 0x558   : > { %v1174_v33 = vmul.f32 %v2517_v32, %v2509_v16  ;;  %v1169_v34 = vpop.xlane.xlu0 %1168  ;;  %v1837_v16 = vld [vmem:[%s2807_s28 + $0x8] sm:$0xff] }
 0x559   : > { %2522 = vrcp.f32 %v1169_v34  ;;  %v2409_v18 = vpack.c.bf16 %v1837_v16, %v1836_v15  ;;  %v1845_v32 = vld [vmem:[%s2807_s28 + $0x48] sm:$0xff]  ;;  %v1846_v34 = vld [vmem:[%s2807_s28 + $0x50] sm:$0xff] }
 0x55a   : > { %1178 = vst.msk [vmem:[%s2813_s5] sm:$0xff] %vm741_vm3, %v1174_v33  ;;  %2316 = vmatmul.mubr.msk.f32.vlgmr.msra.gmra.mrb[2].mxu1 %vm741_vm3, %v1174_v33  ;;  %v2421_v33 = vpack.c.bf16 %v1845_v32, %v1844_v31 }
 0x55b   : > { %v2519_v35 = vpop.eup %2518  ;;  %2324 = vmatpush3.xpose.msk.msra.mxu1 %vm741_vm3, %v2863_v44  ;;  %2325 = vmatprep.mubr.msk.f32.mxu1 %vm2625_vm2, %v2626_v14 }
 0x55c   : > { %v1175_v36 = vmul.f32 %v2519_v35, %v2511_v19  ;;  %2408 = vmatprep.subr.bf16.mxu1 %v2624_v11  ;;  %v1839_v19 = vld [vmem:[%s2807_s28 + $0x18] sm:$0xff] }
 0x55d   : > { %v2412_v24 = vpack.c.bf16 %v1839_v19, %v1838_v17  ;;  %v1847_v35 = vld [vmem:[%s2807_s28 + $0x58] sm:$0xff] }
 0x55e   : > { %1179 = vst.msk [vmem:[%s2813_s5 + $0x8] sm:$0xff] %vm741_vm3, %v1175_v36  ;;  %2321 = vmatmul.mubr.msk.f32.vlgmr.msra.gmra.mrb[8].mxu0 %vm741_vm3, %v1175_v36  ;;  %v2424_v36 = vpack.c.bf16 %v1847_v35, %v1846_v34 }
 0x55f   : > { %v2521_v37 = vpop.eup %2520  ;;  %2329 = vmatpush3.xpose.msk.msra.mxu0 %vm741_vm3, %v2865_v45  ;;  %2330 = vmatprep.mubr.msk.f32.mxu0 %vm2625_vm2, %v2626_v14 }
 0x560   : > { %v1176_v38 = vmul.f32 %v2521_v37, %v2513_v25  ;;  %2396 = vmatprep.subr.bf16.mxu0 %v2624_v11  ;;  %v1840_v25 = vld [vmem:[%s2807_s28 + $0x20] sm:$0xff] }
 0x561   : > { %v1848_v37 = vld [vmem:[%s2807_s28 + $0x60] sm:$0xff] }
 0x562   : > { %1180 = vst.msk [vmem:[%s2813_s5 + $0x10] sm:$0xff] %vm741_vm3, %v1176_v38  ;;  %2326 = vmatmul.mubr.msk.f32.vlgmr.msra.gmra.mrb[4].mxu1 %vm741_vm3, %v1176_v38  ;;  %v1849_v38 = vld [vmem:[%s2807_s28 + $0x68] sm:$0xff] }
 0x563   : > { %v2523_v39 = vpop.eup %2522  ;;  %2387 = vmatprep.mubr.msk.f32.mxu1 %vm2625_vm2, %v2626_v14  ;;  %2410 = vmatpush3.bf16.msra.mxu1 %v2409_v18 }
 0x564   : > { %v1177_v40 = vmul.f32 %v2523_v39, %v2515_v27  ;;  %2411 = vmatprep.subr.bf16.mxu1 %v2624_v11  ;;  %v2415_v27 = vpack.c.bf16 %v1841_v26, %v1840_v25  ;;  %v2427_v39 = vpack.c.bf16 %v1849_v38, %v1848_v37 }
 0x566   : > { %1181 = vst.msk [vmem:[%s2813_s5 + $0x18] sm:$0xff] %vm741_vm3, %v1177_v40  ;;  %2331 = vmatmul.mubr.msk.f32.vlgmr.msra.gmra.mrb[10].mxu0 %vm741_vm3, %v1177_v40 }
 0x567   : > { %2341 = vmatprep.mubr.msk.f32.mxu0 %vm2625_vm2, %v2626_v14  ;;  %2398 = vmatpush3.bf16.msra.mxu0 %v2397_v52 }
 0x568   : > { %2399 = vmatprep.subr.bf16.mxu0 %v2624_v11  ;;  %2413 = vmatpush3.bf16.msra.mxu1 %v2412_v24 }
 0x569   : > { %2414 = vmatprep.subr.bf16.mxu1 %v2624_v11 }
 0x56b   : > { %2401 = vmatpush3.bf16.msra.mxu0 %v2400_v54 }
 0x56c   : > { %2402 = vmatprep.subr.bf16.mxu0 %v2624_v11  ;;  %2416 = vmatpush3.bf16.msra.mxu1 %v2415_v27 }
 0x56d   : > { %2417 = vmatprep.subr.bf16.mxu1 %v2624_v11 }
 0x570   : > { %2419 = vmatpush3.bf16.msra.mxu1 %v2418_v30 }
 0x571   : > { %2420 = vmatprep.subr.bf16.mxu1 %v2624_v11 }
 0x574   : > { %2422 = vmatpush3.bf16.msra.mxu1 %v2421_v33 }
 0x575   : > { %2423 = vmatprep.subr.bf16.mxu1 %v2624_v11 }
 0x578   : > { %2425 = vmatpush3.bf16.msra.mxu1 %v2424_v36 }
 0x579   : > { %2426 = vmatprep.subr.bf16.mxu1 %v2624_v11 }
 0x57c   : > { %2428 = vmatpush3.bf16.msra.mxu1 %v2427_v39 }
 0x57d   : > { %2429 = vmatprep.subr.bf16.mxu1 %v2624_v11 }
 0x62d   : > { %v1254_v41 = vpop.f32.mrb[2].mxu1 }
 0x62e   : > { %1486 = vxpose.xlu1.b32.start.end [1/1] (short) (narrow) %v1254_v41, 8  ;;  %v2317_v42 = vpop.f32.mrb[3].mxu1 }
 0x631   : > { %v1330_v43 = vpop.f32.mrb[8].mxu0 }
 0x632   : > { %1518 = vxpose.xlu0.b32.start.end [1/1] (short) (narrow) %v1330_v43, 8  ;;  %v2322_v44 = vpop.f32.mrb[9].mxu0  ;;  %v1743_v43 = vsub.s32 2, %v2838_v20 }
 0x633   : > { %v1748_v44 = vsub.s32 3, %v2838_v20 }
 0x635   : > { %v1406_v45 = vpop.f32.mrb[4].mxu1 }
 0x636   : > { %v2327_v46 = vpop.f32.mrb[5].mxu1  ;;  %1550 = vxpose.xlu0.b32.start.end [1/1] (short) (narrow) %v1406_v45, 8  ;;  %v1744_v45 = vrot.slane %v2844_v22, %v1743_v43 }
 0x639   : > { %v1482_v47 = vpop.f32.mrb[10].mxu0 }
 0x63a   : > { %1582 = vxpose.xlu0.b32.start.end [1/1] (short) (narrow) %v1482_v47, 8  ;;  %v2332_v48 = vpop.f32.mrb[11].mxu0 }
 0x63b   : > { %v1749_v48 = vrot.slane %v2844_v22, %v1748_v44  ;;  %v1855_v22 = vrot.slane %v2929_v60, %v2847_v23 }
 0x6ae   : > { %v1502_v55 = vpop.trf.xlu1 }
 0x6af   : > { %1622 = vxpose.xlu1.b32.start [1/4] (short) (narrow) %v1502_v55, 8 }
 0x6b2   : > { %v1534_v56 = vpop.trf.xlu0 }
 0x6b3   : > { %1623 = vxpose.xlu1.b32.cont [2/4] (short) (narrow) %v1534_v56, 8 }
 0x6b6   : > { %v1566_v57 = vpop.trf.xlu0 }
 0x6b7   : > { %1624 = vxpose.xlu1.b32.cont [3/4] (short) (narrow) %v1566_v57, 8 }
 0x6ba   : > { %v1598_v58 = vpop.trf.xlu0 }
 0x6bb   : > { %1625 = vxpose.xlu1.b32.end [4/4] (short) (narrow) %v1598_v58, 8 }
 0x72f   : > { %v1638_v59 = vpop.trf.xlu1 }
 0x730   : > { %2342 = vmatmul.mubr.msk.f32.vlgmr.msra.gmra.mrb[12].mxu0 %vm568_vm1, %v1638_v59 }
 0x731   : > { %2352 = vmatprep.mubr.msk.f32.mxu0 %vm2625_vm2, %v2626_v14 }
 0x803   : > { %v1723_v62 = vpop.f32.mrb[12].mxu0 }
 0x804   : > { %v1724_v63 = vadd.f32 %v1723_v62, %v1621_v61  ;;  %v2343_v0 = vpop.f32.mrb[13].mxu0 }
 0x806   : > { %v2934_v2 = vadd.f32 %v1724_v63, %v2820_v1  ;;  %v2403_v1 = vpack.c.bf16 %v1752_v9, %v1751_v8 }
 0x808   : > { %v1728_v3 = vsel %vm568_vm1, %v2934_v2, 0.0  ;;  %2404 = vmatpush3.bf16.msra.mxu0 %v2403_v1 }
 0x809   : > { %1729 = vadd.xlane.f32.xlu0 %v1728_v3  ;;  %2405 = vmatprep.subr.bf16.mxu0 %v2624_v11  ;;  %v1850_v11 = vld [vmem:[%s2807_s28 + $0x70] sm:$0xff] }
 0x80a   : > { %v2430_v52 = vpack.c.bf16 %v1851_v51, %v1850_v11 }
 0x80c   : > { %2407 = vmatpush3.bf16.msra.mxu0 %v2406_v13  ;;  %2431 = vmatpush3.bf16.msra.mxu1 %v2430_v52 }
 0x896   : > { %v1730_v14 = vpop.xlane.xlu0 %1729 }
 0x897   : > { %v1731_v4 = vmul.f32 0.03125, %v1730_v14 }
 0x899   : > { %v1732_v5 = vsub.f32 %v2934_v2, %v1731_v4 }
 0x89b   : > { %v1733_v6 = vmul.f32 %v1732_v5, %v1732_v5 }
 0x89d   : > { %v1734_v7 = vsel %vm568_vm1, %v1733_v6, 0.0 }
 0x89e   : > { %1735 = vadd.xlane.f32.xlu1 %v1734_v7 }
 0x92b   : > { %v1736_v40 = vpop.xlane.xlu1 %1735 }
 0x92c   : > { %v1737_v41 = vmul.f32 0.03125, %v1736_v40 }
 0x92e   : > { %v1738_v42 = vadd.f32 1e-05, %v1737_v41 }
 0x930   : > { %2524 = vrsqrt.f32 %v1738_v42 }
 0x93a   : > { %v2525_v46 = vpop.eup %2524 }
 0x93b   : > { %v1740_v47 = vmul.f32 %v2525_v46, %v1732_v5 }
 0x93d   : > { %v1745_v49 = vmul.f32 %v1744_v45, %v1740_v47 }
 0x93f   : > { %v1750_v50 = vadd.f32 %v1749_v48, %v1745_v49 }
 0x941   : > { %2353 = vmatmul.mubr.msk.f32.vlgmr.msra.gmra.mrb[14].mxu0 %vm568_vm1, %v1750_v50 }
 0xa14   : > { %v1831_v20 = vpop.f32.mrb[14].mxu0 }
 0xa15   : > { %v1832_v54 = vadd.f32 %v2224_v53, %v1831_v20  ;;  %v2354_v55 = vpop.f32.mrb[15].mxu0 }
 0xa17   : > { %v1835_v56 = vmax.f32 %v1832_v54, 0.0 }
 0xa19   : > { %2388 = vmatmul.mubr.f32.vlgmr.msra.gmra.mrb[6].mxu1 %v1835_v56 }
 0xaeb   : > { %1931 = sbr.rel (%p2226_p1) target bundleno = 3130 (0xc3a), region = 68 }
 0xaec   : > { %v1922_v57 = vpop.f32.mrb[6].mxu1 }
 0xaed   : > { %v1923_v58 = vadd.f32 %v1922_v57, %v1855_v22  ;;  %v2389_v59 = vpop.f32.mrb[7].mxu1 }
 0xaef   : > { %v1926_v61 = vadd.f32 %v1923_v58, %v2934_v2  ;;  %v1932_v2 = vld [vmem:[%s3097_s14] sm:$0x3] (!%p2226_p1) }
 0xaf0   : > { %v1949_v7 = vrot.slane (!%p2226_p1), %v1932_v2, %v2841_v21  ;;  %v1954_v1 = vrot.slane (!%p2226_p1), %v1932_v2, %v2847_v23 }
 0xaf1   : > { %1927 = vst.msk [vmem:[#allocation2] sm:$0xff] %vm568_vm1, %v1926_v61  ;;  %v1933_v62 = vsel (!%p2226_p1), %vm568_vm1, %v1926_v61, 0.0 }
 0xaf2   : > { %1934 = vadd.xlane.f32.xlu0 %v1933_v62 }
 0xb7f   : > { %v1935_v63 = vpop.xlane.xlu0 %1934 }
 0xb80   : > { %v1936_v0 = vmul.f32 0.03125, %v1935_v63 }
 0xb82   : > { %v1937_v3 = vsub.f32 %v1926_v61, %v1936_v0 }
 0xb84   : > { %v1938_v14 = vmul.f32 %v1937_v3, %v1937_v3 }
 0xb86   : > { %v1939_v4 = vsel %vm568_vm1, %v1938_v14, 0.0 }
 0xb87   : > { %1940 = vadd.xlane.f32.xlu0 %v1939_v4 }
 0xc14   : > { %v1941_v60 = vpop.xlane.xlu0 %1940 }
 0xc15   : > { %v1942_v5 = vmul.f32 0.03125, %v1941_v60 }
 0xc17   : > { %v1943_v6 = vadd.f32 1e-05, %v1942_v5 }
 0xc19   : > { %2526 = vrsqrt.f32 %v1943_v6 }
 0xc23   : > { %v2527_v8 = vpop.eup %2526 }
 0xc24   : > { %v1945_v9 = vmul.f32 %v2527_v8, %v1937_v3 }
 0xc26   : > { %v1950_v10 = vmul.f32 %v1949_v7, %v1945_v9 }
 0xc28   : > { %v1955_v12 = vadd.f32 %v1954_v1, %v1950_v10 }
 0xc2a   : > { %v1956_v13 = vsel %vm568_vm1, %v1955_v12, 0.0 }
 0xc2b   : > { %v1957_v15 = vrot.slane %v1956_v13, 4 }
 0xc2d   : > { %v1958_v16 = vadd.f32 %v1957_v15, %v1956_v13 }
 0xc2f   : > { %v1959_v17 = vrot.slane %v1958_v16, 2 }
 0xc31   : > { %v1960_v18 = vadd.f32 %v1959_v17, %v1958_v16 }
 0xc33   : > { %v1961_v19 = vrot.slane %v1960_v18, 1 }
 0xc35   : > { %v1962_v24 = vadd.f32 %v1961_v19, %v1960_v18 }
 0xc37   : > { %v1964_v25 = vmul.f32 0.125, %v1962_v24 }
 0xc39   : > { %1966 = vst.msk [vmem:[%s2817_s1] sm:$0x1] %vm1965_vm4, %v1964_v25 }
 0xc3a PF: > { %s3098_s20 = sld [smem:[#allocation8_spill]]  ;;  %s1989_s10 = sshll.u32 %s2817_s1, 4  ;;  %s1990_s10 = int_to_ptr.vmem [resolvable:$true] %s1989_s10 }
 0xc3b   : > { %s3100_s23 = sld [smem:[#allocation23_spill]]  ;;  %s3102_s29 = sand.u32 1, %s2598_s18  }
 0xc3c   : > { %s1968_s21 = scalar_lea.sflag [#allocation4], %s3102_s29  ;;  %s2528_s28 = scalar_lea.vmem %s1990_s10, 16 }
 0xc3d   : > { %p2529_p2 = scmp.ne.s32.totalorder %s1990_s10, %s2528_s28  ;;  %s2627_s22 = smov [#allocation3]  }
 0xc3e   : > { %s2532_s13 = sshll.u32 %s2627_s22, 4  ;;  %s2533_s13 = int_to_ptr.vmem [resolvable:$false] %s2532_s13 }
 0xc3f   : > { %p2530_p4 = pnand %p2529_p2, %p2737_p3  ;;  %s2534_s15 = scalar_lea.vmem %s2533_s13, 32 }
 0xc40   : > { %s2227_s12 = sshll.u32 %s3098_s20, 4  ;;  %p2535_p6 = scmp.lt.s32.totalorder %s1990_s10, %s2533_s13 }
 0xc41   : > { %s3101_s30 = smov %s3100_s23  ;;  %s2996_s17 = scalar_lea.hbm %s3100_s23, %s2227_s12 }
 0xc42   : > { %p2531_p5 = pneg %p2530_p4  ;;  %p2536_p7 = scmp.lt.s32.totalorder %s2534_s15, %s2528_s28 }
 0xc44   : > { %p2537_p8 = por %p2536_p7, %p2535_p6 }
 0xc46   : > { %p2538_p10 = pnand %p2537_p8, %p2531_p5 }
 0xc48   : > { %2541 = shalt.err (!%p2538_p10)
}
 0xc49   : > { %s2542_s0 = scalar_lea.hbm %s2996_s17, 16  ;;  %s2546_s4 = scalar_lea.hbm %s3101_s30, 32 }
 0xc4a   : > { %p2543_p11 = scmp.ne.s32.totalorder %s2996_s17, %s2542_s0  ;;  %p2547_p0 = scmp.lt.u32.totalorder %s2996_s17, %s3101_s30 }
 0xc4b   : > { %p2548_p1 = scmp.lt.u32.totalorder %s2546_s4, %s2542_s0  ;;  %p2550_p4 = scmp.lt.u32.totalorder %s2542_s0, %s2996_s17 }
 0xc4c   : > { %p2544_p12 = pnand %p2543_p11, %p2737_p3 }
 0xc4d   : > { %p2549_p2 = por %p2548_p1, %p2547_p0 }
 0xc4e   : > { %p2545_p13 = pneg %p2544_p12 }
 0xc4f   : > { %p2551_p5 = por %p2550_p4, %p2549_p2 }
 0xc51   : > { %p2552_p6 = pnand %p2551_p5, %p2545_p13 }
 0xc53   : > { %2555 = shalt.err (!%p2552_p6)
}
 0xc54   : > { %2432 = dma.vmem_to_hbm [thread:$0]  (%p2737_p3), %s1990_s10, 16, %s2996_s17, %s1968_s21  }
 0xc55 PF: > { %s3103_s19 = sld [smem:[#allocation11_spill]]  ;;  %s3104_s24 = sld [smem:[#allocation6_spill]] }
 0xc5b   : > { %p2438_p7 = scmp.ge.s32.totalorder %s3103_s19, 2  ;;  %s2004_s14 = sand.u32 1, %s3104_s24  }
 0xc5c   : > { %s2005_s20 = scalar_lea.sflag [#allocation4], %s2004_s14 }
 0xc5d   : > { %p2435_p8 = pnand %p2438_p7, %p2747_p9 }
 0xc5f   : > { %2589 = dma.done.wait (!%p2435_p8), %s2005_s20, 16  }
 0xc60   : > { %2591 = vsyncadd (!%p2435_p8), %s2005_s20, 4294967280  ;;  %s25_s24 = sadd.s32 1, %s3103_s19   ;;  %s3106_s12 = sld [smem:[#allocation7_spill]] }
 0xc61   : > { %p22_p10 = scmp.ge.s32.totalorder %s25_s24, 6   ;;  %s3107_s19 = sld [smem:[#allocation16_spill]] }
 0xc62   : > { %s3108_s20 = sld [smem:[#allocation9_spill]]  ;;  %s3109_s21 = sld [smem:[#allocation10_spill]] }
 0xc63   : > { %s3110_s22 = sld [smem:[#allocation12_spill]]  ;;  %s3111_s23 = sld [smem:[#allocation14_spill]] }
 0xc64   : > { %s3112_s17 = smov %s2598_s18  ;;  %24 = sbr.rel (!%p22_p10) target bundleno = 13 (0xd), region = 139 }
 0xc66   : > { %s3113_s18 = smov %s3106_s12 }
 0xc6b   :  { %2021 = vsyncpa [#allocation4], 1 }
 0xc6c   :  { %2023 = vsyncpa [#allocation4 + $0x1], 1 }

</bundles_post_ra>
